<compile_context>
chip_gen: v7x
topology: tpu7x:2x2x1
jax: 0.10.0
libtpu: 0.0.40
codegen_flags: <defaults>
</compile_context>

<pallas_src>
import jax
import jax.numpy as jnp
from jax import lax
from jax.experimental import pallas as pl
from jax.experimental.pallas import tpu as pltpu


LN_EPS = 1e-5   # torch.nn.LayerNorm default eps
LANE = 128      # TPU lane width


def _round_up(x, m):
    return (x + m - 1) // m * m


def _vmem_limit_bytes(n_pad, f_pad):
    """Explicit scoped-VMEM budget for the resident-A fused kernel."""
    a_bytes = n_pad * n_pad * 2              # bf16 adjacency, single (manual) buffer
    x_bytes = 2 * n_pad * f_pad * 2          # bf16 input features (double-buffered)
    o_bytes = 2 * n_pad * f_pad * 4          # f32 resident output / hidden state
    w_bytes = 2 * f_pad * f_pad * 2          # bf16 per-layer weight (double-buffered)
    b_bytes = 2 * f_pad * 4                  # f32 per-layer bias
    tmp_bytes = 6 * n_pad * f_pad * 4        # xw/agg/act/LN temporaries + headroom
    total = a_bytes + x_bytes + o_bytes + w_bytes + b_bytes + tmp_bytes + (4 << 20)
    return int(min(100 << 20, max(32 << 20, total)))


def _fused_gcn_kernel(finv_ref, a_hbm_ref, x_ref, w_ref, b_ref, o_ref,
                      a_vmem, a_sem):
    """One grid step == one GraphConv + ReLU + LayerNorm layer.

    finv_ref  : SMEM (L,) f32        -- 1 / true_output_width per layer
    a_hbm_ref : HBM  (Np, Np) bf16   -- normalized adjacency (manual DMA, once)
    x_ref     : VMEM (Np, Fp) bf16   -- padded input features (read at l == 0)
    w_ref     : VMEM (1, Fp, Fp) bf16-- this layer's padded weight
    b_ref     : VMEM (1, 1, Fp) f32  -- this layer's padded bias
    o_ref     : VMEM (Np, Fp) f32    -- resident output block == hidden state
    a_vmem    : VMEM (Np, Np) bf16   -- adjacency scratch (single buffer)
    a_sem     : DMA semaphore for the adjacency copy
    """
    l = pl.program_id(0)

    a_copy = pltpu.make_async_copy(a_hbm_ref, a_vmem, a_sem)

    @pl.when(l == 0)
    def _():
        # Kick off the adjacency DMA; it overlaps with layer 0's H @ W matmul.
        a_copy.start()
        # Seed the resident hidden state with the input features.
        o_ref[...] = x_ref[...].astype(jnp.float32)

    # 1 / F for this layer (SMEM scalar) -- read before the DMA wait.
    finv = finv_ref[l]

    h = o_ref[...].astype(jnp.bfloat16)                  # (Np, Fp)

    # Feature transform on the MXU (bf16 inputs, f32 accumulation).
    xw = jnp.dot(h, w_ref[0], preferred_element_type=jnp.float32)

    @pl.when(l == 0)
    def _():
        a_copy.wait()                                     # A needed only from here

    # Symmetric-normalized aggregation: A_hat @ (H W), bf16 inputs, f32 acc.
    agg = jnp.dot(a_vmem[...], xw.astype(jnp.bfloat16),
                  preferred_element_type=jnp.float32)

    # Bias + ReLU (f32). Pad lanes have zero bias -> stay exactly 0, so the
    # LN sums below need no lane mask.
    act = jnp.maximum(agg + b_ref[0], 0.0)

    # LayerNorm over the TRUE feature width: reciprocal-multiply + E[x^2]-mean^2.
    mean = jnp.sum(act, axis=-1, keepdims=True) * finv
    var = jnp.maximum(jnp.sum(act * act, axis=-1, keepdims=True) * finv
                      - mean * mean, 0.0)
    o_ref[...] = (act - mean) * lax.rsqrt(var + LN_EPS)


@jax.jit
def graph_gcn_forward(a_hat, features, params):
    """Full forward: fused stack of (GraphConv + ReLU + LayerNorm) layers."""
    n, in_feats = features.shape
    n_layers = len(params)
    out_dims = [w.shape[1] for w, _ in params]
    max_f = max([in_feats] + [w.shape[0] for w, _ in params] + out_dims)
    f_pad = _round_up(max_f, LANE)
    n_pad = _round_up(n, LANE)

    # Pad to lane-dense / tile-aligned shapes. Zero pads are semantically inert
    # for the real rows/columns: zero adjacency rows/cols and zero weight
    # rows/cols contribute nothing. NOTE: padded node rows (>= n) do pick up
    # the bias/LayerNorm and become nonzero inside the kernel -- they never
    # influence real rows (A pad columns are zero) and are sliced off below,
    # but do NOT reuse the padded H for residuals etc. without masking.
    a_pad = jnp.zeros((n_pad, n_pad), jnp.bfloat16)
    a_pad = a_pad.at[:n, :n].set(a_hat.astype(jnp.bfloat16))
    x_pad = jnp.zeros((n_pad, f_pad), jnp.bfloat16)
    x_pad = x_pad.at[:n, :in_feats].set(features.astype(jnp.bfloat16))

    w_stack = jnp.stack([
        jnp.zeros((f_pad, f_pad), jnp.bfloat16)
           .at[:w.shape[0], :w.shape[1]].set(w.astype(jnp.bfloat16))
        for w, _ in params
    ])                                                    # (L, Fp, Fp) bf16
    b_stack = jnp.stack([
        jnp.zeros((1, f_pad), jnp.float32)
           .at[:, :b.shape[-1]].set(b.reshape(1, -1).astype(jnp.float32))
        for _, b in params
    ])                                                    # (L, 1, Fp) f32
    f_inv = jnp.array([1.0 / d for d in out_dims], jnp.float32)   # (L,)

    out_pad = pl.pallas_call(
        _fused_gcn_kernel,
        out_shape=jax.ShapeDtypeStruct((n_pad, f_pad), jnp.float32),
        grid_spec=pltpu.PrefetchScalarGridSpec(
            num_scalar_prefetch=1,
            grid=(n_layers,),
            in_specs=[
                # A_hat: raw HBM ref; manual single-buffered DMA overlapped with
                # the first H @ W matmul (see kernel).
                pl.BlockSpec(memory_space=pl.ANY),
                # Input features: resident block (only read at l == 0).
                pl.BlockSpec((n_pad, f_pad), lambda l, finv: (0, 0)),
                # Per-layer weight block streamed along the layer axis.
                pl.BlockSpec((1, f_pad, f_pad), lambda l, finv: (l, 0, 0)),
                # Per-layer bias block.
                pl.BlockSpec((1, 1, f_pad), lambda l, finv: (l, 0, 0)),
            ],
            # Constant index map -> resident across layers; doubles as the
            # hidden-state accumulator (written every layer).
            out_specs=pl.BlockSpec((n_pad, f_pad), lambda l, finv: (0, 0)),
            scratch_shapes=[
                pltpu.VMEM((n_pad, n_pad), jnp.bfloat16),   # adjacency, 1 buffer
                pltpu.SemaphoreType.DMA,                     # its completion sem
            ],
        ),
        compiler_params=pltpu.CompilerParams(
            # Layer axis is a sequential dependency chain (accumulator pattern).
            dimension_semantics=("arbitrary",),
            vmem_limit_bytes=_vmem_limit_bytes(n_pad, f_pad),
        ),
    )(f_inv, a_pad, x_pad, w_stack, b_stack)

    return out_pad[:n, :out_dims[-1]]


def init_graph_gcn_params(key, in_feats, n_hidden, n_classes, n_layers):
    """Deterministic parameter init matching the module's layer shapes.

    Layers: [in->hid] + (n_layers-1) * [hid->hid] + [hid->classes]
    DGL GraphConv: weight ~ xavier_uniform, bias = zeros.
    """
    dims = [in_feats] + [n_hidden] * n_layers + [n_classes]
    params = []
    for li in range(len(dims) - 1):
        fi, fo = dims[li], dims[li + 1]
        key, sub = jax.random.split(key)
        limit = (6.0 / (fi + fo)) ** 0.5  # xavier_uniform
        w = jax.random.uniform(sub, (fi, fo), jnp.float32, -limit, limit)
        b = jnp.zeros((1, fo), jnp.float32)
        params.append((w, b))
    return tuple(params)


def normalize_adjacency(adj):
    """Symmetric GCN normalization: D^{-1/2} A D^{-1/2} (glue, plain JAX)."""
    deg = jnp.sum(adj, axis=1)
    inv_sqrt = jnp.where(deg > 0, lax.rsqrt(jnp.maximum(deg, 1e-12)), 0.0)
    return adj * inv_sqrt[:, None] * inv_sqrt[None, :]


def _reference_forward(a_hat, features, params):
    """Pure-JAX f32 reference of the same math (for a sanity check)."""
    h = features
    for w, b in params:
        h = jnp.maximum(a_hat @ (h @ w) + b, 0.0)
        mean = jnp.mean(h, axis=-1, keepdims=True)
        var = jnp.mean(jnp.square(h - mean), axis=-1, keepdims=True)
        h = (h - mean) * lax.rsqrt(var + LN_EPS)
    return h


if __name__ == "__main__":
    # Small, module-consistent shapes.
    N = 64          # number of graph nodes
    IN_FEATS = 16
    N_HIDDEN = 32
    N_CLASSES = 8
    N_LAYERS = 2    # -> 3 GraphConv layers total: 16->32, 32->32, 32->8

    key = jax.random.PRNGKey(0)
    k_adj, k_feat, k_param = jax.random.split(key, 3)

    # Deterministic random undirected graph with self-loops (positive degrees,
    # as DGL GraphConv requires non-zero in-degrees).
    rand = jax.random.uniform(k_adj, (N, N))
    adj = (rand < 0.1).astype(jnp.float32)
    adj = jnp.maximum(adj, adj.T)                           # symmetrize
    adj = jnp.maximum(adj, jnp.eye(N, dtype=jnp.float32))   # add self-loops
    a_hat = normalize_adjacency(adj)

    features = jax.random.normal(k_feat, (N, IN_FEATS), jnp.float32)
    params = init_graph_gcn_params(k_param, IN_FEATS, N_HIDDEN, N_CLASSES, N_LAYERS)

    out = graph_gcn_forward(a_hat, features, params)
    out = jax.block_until_ready(out)

    assert out.shape == (N, N_CLASSES), out.shape
    assert bool(jnp.all(jnp.isfinite(out))), "non-finite output"

    # Loose sanity check vs. f32 reference (kernel uses bf16 MXU inputs,
    # including a bf16-quantized adjacency).
    ref = _reference_forward(a_hat, features, params)
    max_err = float(jnp.max(jnp.abs(out - ref)))
    assert max_err < 2e-1, f"max abs err vs f32 reference too large: {max_err}"

    print("KERNEL_OK")
</pallas_src>

<mosaic_0001>
module attributes {stable_mosaic.version = 11 : i64} {
  func.func @_fused_gcn_kernel(%arg0: i32, %arg1: memref<3xf32, #tpu.memory_space<smem>>, %arg2: memref<128x128xbf16, #tpu.memory_space<any>>, %arg3: memref<128x128xbf16, #tpu.memory_space<vmem>>, %arg4: memref<1x128x128xbf16, #tpu.memory_space<vmem>>, %arg5: memref<1x1x128xf32, #tpu.memory_space<vmem>>, %arg6: memref<128x128xf32, #tpu.memory_space<vmem>>, %arg7: memref<128x128xbf16, #tpu.memory_space<vmem>>, %arg8: memref<!tpu.dma_semaphore, #tpu.memory_space<semaphore_mem>>) attributes {dimension_semantics = [#tpu.dimension_semantics<arbitrary>], iteration_bounds = array<i64: 3>, scalar_prefetch = 1 : i64, scratch_operands = 2 : i64, tpu.core_type = #tpu.core_type<tc>, window_params = [{}, {pipeline_mode = #tpu.pipeline_mode<synchronous>, transform_indices = @transform_1, window_bounds = array<i64: 128, 128>}, {transform_indices = @transform_2, window_bounds = array<i64: 1, 128, 128>}, {transform_indices = @transform_3, window_bounds = array<i64: 1, 1, 128>}, {pipeline_mode = #tpu.pipeline_mode<synchronous>, transform_indices = @transform_4, window_bounds = array<i64: 128, 128>}]} {
    %c0_i32 = arith.constant 0 : i32
    %0 = arith.cmpi eq, %arg0, %c0_i32 : i32
    %1 = arith.extui %0 : i1 to i32
    %c0_i32_0 = arith.constant 0 : i32
    %2 = arith.cmpi ne, %1, %c0_i32_0 : i32
    scf.if %2 {
      tpu.enqueue_dma source(%arg2 : memref<128x128xbf16, #tpu.memory_space<any>>) target(%arg7 : memref<128x128xbf16, #tpu.memory_space<vmem>>) target_semaphore(%arg8 : memref<!tpu.dma_semaphore, #tpu.memory_space<semaphore_mem>>)
      %c0_20 = arith.constant 0 : index
      %c0_21 = arith.constant 0 : index
      %43 = vector.load %arg3[%c0_20, %c0_21] : memref<128x128xbf16, #tpu.memory_space<vmem>>, vector<128x128xbf16>
      %44 = arith.extf %43 : vector<128x128xbf16> to vector<128x128xf32>
      %c0_22 = arith.constant 0 : index
      %c0_23 = arith.constant 0 : index
      %45 = vector.load %arg6[%c0_22, %c0_23] : memref<128x128xf32, #tpu.memory_space<vmem>>, vector<128x128xf32>
      tpu.vector_store %arg6[%c0_22, %c0_23], %44 {strides = array<i32>} : memref<128x128xf32, #tpu.memory_space<vmem>>, vector<128x128xf32>,
    } else {
    }
    %3 = arith.index_cast %arg0 : i32 to index
    %4 = memref.load %arg1[%3] : memref<3xf32, #tpu.memory_space<smem>>
    %c0 = arith.constant 0 : index
    %c0_1 = arith.constant 0 : index
    %5 = vector.load %arg6[%c0, %c0_1] : memref<128x128xf32, #tpu.memory_space<vmem>>, vector<128x128xf32>
    %6 = arith.truncf %5 : vector<128x128xf32> to vector<128x128xbf16>
    %c0_2 = arith.constant 0 : index
    %c0_3 = arith.constant 0 : index
    %c0_4 = arith.constant 0 : index
    %7 = vector.load %arg4[%c0_2, %c0_3, %c0_4] : memref<1x128x128xbf16, #tpu.memory_space<vmem>>, vector<1x128x128xbf16>
    %8 = vector.shape_cast %7 : vector<1x128x128xbf16> to vector<128x128xbf16>
    %cst = arith.constant dense<0.000000e+00> : vector<128x128xf32>
    %9 = tpu.matmul %6, %8, %cst {dimension_numbers = #tpu.dot_dimension_numbers<[1], [0], [0], [1], [0, 0, 1, 1], [], []>} : vector<128x128xbf16>, vector<128x128xbf16>, vector<128x128xf32> -> vector<128x128xf32>
    %c0_i32_5 = arith.constant 0 : i32
    %10 = arith.cmpi eq, %arg0, %c0_i32_5 : i32
    %11 = arith.extui %10 : i1 to i32
    %c0_i32_6 = arith.constant 0 : i32
    %12 = arith.cmpi ne, %11, %c0_i32_6 : i32
    scf.if %12 {
      tpu.wait_dma2 semaphore(%arg8 : memref<!tpu.dma_semaphore, #tpu.memory_space<semaphore_mem>>) src(%arg2 : memref<128x128xbf16, #tpu.memory_space<any>>) dst(%arg7 : memref<128x128xbf16, #tpu.memory_space<vmem>>)
    } else {
    }
    %c0_7 = arith.constant 0 : index
    %c0_8 = arith.constant 0 : index
    %13 = vector.load %arg7[%c0_7, %c0_8] : memref<128x128xbf16, #tpu.memory_space<vmem>>, vector<128x128xbf16>
    %14 = arith.truncf %9 : vector<128x128xf32> to vector<128x128xbf16>
    %cst_9 = arith.constant dense<0.000000e+00> : vector<128x128xf32>
    %15 = tpu.matmul %13, %14, %cst_9 {dimension_numbers = #tpu.dot_dimension_numbers<[1], [0], [0], [1], [0, 0, 1, 1], [], []>} : vector<128x128xbf16>, vector<128x128xbf16>, vector<128x128xf32> -> vector<128x128xf32>
    %c0_10 = arith.constant 0 : index
    %c0_11 = arith.constant 0 : index
    %c0_12 = arith.constant 0 : index
    %16 = vector.load %arg5[%c0_10, %c0_11, %c0_12] : memref<1x1x128xf32, #tpu.memory_space<vmem>>, vector<1x1x128xf32>
    %17 = vector.shape_cast %16 : vector<1x1x128xf32> to vector<1x128xf32>
    %18 = vector.broadcast %17 : vector<1x128xf32> to vector<128x128xf32>
    %19 = arith.addf %15, %18 : vector<128x128xf32>
    %cst_13 = arith.constant 0.000000e+00 : f32
    %20 = vector.broadcast %cst_13 : f32 to vector<128x128xf32>
    %21 = arith.maximumf %19, %20 : vector<128x128xf32>
    %cst_14 = arith.constant dense<0.000000e+00> : vector<128xf32>
    %22 = vector.multi_reduction <add>, %21, %cst_14 [1] : vector<128x128xf32> to vector<128xf32>
    %23 = vector.shape_cast %22 : vector<128xf32> to vector<128x1xf32>
    %24 = vector.broadcast %4 : f32 to vector<128x1xf32>
    %25 = arith.mulf %23, %24 : vector<128x1xf32>
    %26 = arith.mulf %21, %21 : vector<128x128xf32>
    %cst_15 = arith.constant dense<0.000000e+00> : vector<128xf32>
    %27 = vector.multi_reduction <add>, %26, %cst_15 [1] : vector<128x128xf32> to vector<128xf32>
    %28 = vector.shape_cast %27 : vector<128xf32> to vector<128x1xf32>
    %29 = vector.broadcast %4 : f32 to vector<128x1xf32>
    %30 = arith.mulf %28, %29 : vector<128x1xf32>
    %31 = arith.mulf %25, %25 : vector<128x1xf32>
    %32 = arith.subf %30, %31 : vector<128x1xf32>
    %cst_16 = arith.constant 0.000000e+00 : f32
    %33 = vector.broadcast %cst_16 : f32 to vector<128x1xf32>
    %34 = arith.maximumf %32, %33 : vector<128x1xf32>
    %35 = vector.broadcast %25 : vector<128x1xf32> to vector<128x128xf32>
    %36 = arith.subf %21, %35 : vector<128x128xf32>
    %cst_17 = arith.constant 9.99999974E-6 : f32
    %37 = vector.broadcast %cst_17 : f32 to vector<128x1xf32>
    %38 = arith.addf %34, %37 : vector<128x1xf32>
    %39 = math.rsqrt %38 : vector<128x1xf32>
    %40 = vector.broadcast %39 : vector<128x1xf32> to vector<128x128xf32>
    %41 = arith.mulf %36, %40 : vector<128x128xf32>
    %c0_18 = arith.constant 0 : index
    %c0_19 = arith.constant 0 : index
    %42 = vector.load %arg6[%c0_18, %c0_19] : memref<128x128xf32, #tpu.memory_space<vmem>>, vector<128x128xf32>
    tpu.vector_store %arg6[%c0_18, %c0_19], %41 {strides = array<i32>} : memref<128x128xf32, #tpu.memory_space<vmem>>, vector<128x128xf32>,
    return
  }
  func.func @transform_1(%arg0: i32, %arg1: memref<3xf32, #tpu.memory_space<smem>>) -> (i32, i32) {
    %c0_i32 = arith.constant 0 : i32
    %c0_i32_0 = arith.constant 0 : i32
    %c0_i32_1 = arith.constant 0 : i32
    return %c0_i32, %c0_i32_0 : i32, i32
  }
  func.func @transform_2(%arg0: i32, %arg1: memref<3xf32, #tpu.memory_space<smem>>) -> (i32, i32, i32) {
    %c0_i32 = arith.constant 0 : i32
    %c0_i32_0 = arith.constant 0 : i32
    %c0_i32_1 = arith.constant 0 : i32
    return %arg0, %c0_i32, %c0_i32_0 : i32, i32, i32
  }
  func.func @transform_3(%arg0: i32, %arg1: memref<3xf32, #tpu.memory_space<smem>>) -> (i32, i32, i32) {
    %c0_i32 = arith.constant 0 : i32
    %c0_i32_0 = arith.constant 0 : i32
    %c0_i32_1 = arith.constant 0 : i32
    return %arg0, %c0_i32, %c0_i32_0 : i32, i32, i32
  }
  func.func @transform_4(%arg0: i32, %arg1: memref<3xf32, #tpu.memory_space<smem>>) -> (i32, i32) {
    %c0_i32 = arith.constant 0 : i32
    %c0_i32_0 = arith.constant 0 : i32
    %c0_i32_1 = arith.constant 0 : i32
    return %c0_i32, %c0_i32_0 : i32, i32
  }
}

</mosaic_0001>

<bundles_post_ra>
// kernel: graph_gcn_forward.1
= control target key start
LH: loop header
LB: loop body
LE: loop exit
PB: predicated region body
PF: predicated region fallthrough
CT: control target
= control target key end

     0   :  { %s1611_s0 = inlined_call_operand.vmem [shape: f32[3], index: 0, kind: input, shape index: {}]   ;;  %s1612_s1 = inlined_call_operand.vmem [shape: bf16[128,128], index: 1, kind: input, shape index: {}]   ;;  %s1613_s2 = inlined_call_operand.vmem [shape: bf16[128,128], index: 2, kind: input, shape index: {}]   ;;  %s1614_s3 = inlined_call_operand.vmem [shape: bf16[3,128,128], index: 3, kind: input, shape index: {}]   ;;  %s1615_s4 = inlined_call_operand.vmem [shape: f32[3,1,128], index: 4, kind: input, shape index: {}]   ;;  %s1616_s5 = inlined_call_operand.vmem [shape: f32[128,128], index: 5, kind: output, shape index: {}]  }
   0x1   :  { %s10_s20 = sshll.u32 %s1611_s0, 4  ;;  %s11_s20 = int_to_ptr.vmem [resolvable:$true] %s10_s20 }
   0x2   :  { %s1116_s21 = scalar_lea.vmem %s11_s20, 16  ;;  %p1121_p1 = scmp.lt.s32.totalorder %s11_s20, %s11_s20 }
   0x3   :  { %p1117_p0 = scmp.ne.s32.totalorder %s11_s20, %s1116_s21  ;;  %p1122_p2 = scmp.lt.s32.totalorder %s1116_s21, %s1116_s21 }
   0x5   :  { %p1123_p3 = por %p1122_p2, %p1121_p1 }
   0x7   :  { %p1124_p4 = pnand %p1123_p3, %p1117_p0 }
   0x9   :  { %1127 = shalt.err (!%p1124_p4)  }
   0xa   :  { %s1142_s22 = smov [#allocation5]  }
   0xb   :  { %13 = dma.vmem_to_smem %s11_s20, 16, %s1142_s22, [#allocation4] }
   0xc   :  { %1132 = dma.done.wait [#allocation4], 16 }
   0xd   :  { %1133 = vsyncadd [#allocation4], 4294967280 }
   0xe   :  { %15 = sfence }
   0xf   :  { %s1176_s23 = smov 0  }
  0x10 LB: > { %s1182_s0 = sadd.s32 4294967295, %s1140_s23   ;;  %p911_p5 = scmp.ge.s32.totalorder %s1140_s23, 1  ;;  %s1140_s23 = sphi %s1176_s23, %s21_s23  }
  0x11   : > { %p148_p6 = scmp.lt.s32.totalorder %s1140_s23, 4 }
  0x13   : > { %p149_p7 = pnand %p911_p5, %p148_p6 }
  0x14   : > { %p170_p8 = scmp.lt.s32.totalorder (!%p149_p7), %s1182_s0, 2  ;;  %p914_p9 = scmp.ne.s32.totalorder (!%p149_p7), %s1182_s0, 0 }
  0x15   : > { %152 = sbr.rel (%p149_p7) target bundleno = 793 (0x319), region = 32 }
  0x1c   : > { %s1188_s24 = scalar_select %p170_p8, %s1182_s0, 2 }
  0x1d   : > { %182 = sbr.rel (%p914_p9) target bundleno = 47 (0x2f), region = 36  ;;  %v215_v0 = vld [vmem:[%s1612_s1] sm:$0xff] (!%p914_p9)  ;;  %v217_v1 = vld [vmem:[%s1612_s1 + $0x8] sm:$0xff] (!%p914_p9)  ;;  %v219_v2 = vld [vmem:[%s1612_s1 + $0x10] sm:$0xff] (!%p914_p9) }
  0x1e   : > { %s928_s25 = sshll.u32 %s1188_s24, 6  ;;  %s177_s28 = scalar_lea.vmem %s1615_s4, %s1188_s24  ;;  %216 = vst [vmem:[#allocation2] sm:$0xff] (!%p914_p9), %v215_v0  ;;  %218 = vst [vmem:[#allocation2 + $0x8] sm:$0xff] (!%p914_p9), %v217_v1  ;;  %v221_v3 = vld [vmem:[%s1612_s1 + $0x18] sm:$0xff] (!%p914_p9)  ;;  %v223_v4 = vld [vmem:[%s1612_s1 + $0x20] sm:$0xff] (!%p914_p9) }
  0x1f   : > { %s1198_s6 = scalar_lea.vmem %s1614_s3, %s928_s25  ;;  %220 = vst [vmem:[#allocation2 + $0x10] sm:$0xff] (!%p914_p9), %v219_v2  ;;  %v225_v5 = vld [vmem:[%s1612_s1 + $0x28] sm:$0xff] (!%p914_p9)  ;;  %222 = vst [vmem:[#allocation2 + $0x18] sm:$0xff] (!%p914_p9), %v221_v3  ;;  %v227_v6 = vld [vmem:[%s1612_s1 + $0x30] sm:$0xff] (!%p914_p9) }
  0x20   : > { %224 = vst [vmem:[#allocation2 + $0x20] sm:$0xff] (!%p914_p9), %v223_v4  ;;  %226 = vst [vmem:[#allocation2 + $0x28] sm:$0xff] (!%p914_p9), %v225_v5  ;;  %v229_v7 = vld [vmem:[%s1612_s1 + $0x38] sm:$0xff] (!%p914_p9) }
  0x21   : > { %228 = vst [vmem:[#allocation2 + $0x30] sm:$0xff] (!%p914_p9), %v227_v6  ;;  %230 = vst [vmem:[#allocation2 + $0x38] sm:$0xff] (!%p914_p9), %v229_v7 }
  0x24   : > { %238 = vsyncadd [#allocation3], 1024  ;;  %v930_v8 = vld [vmem:[%s1613_s2] sm:$0xff]   ;;  %v961_v9 = vld [vmem:[%s1613_s2 + $0x8] sm:$0xff]  }
  0x25   : > { %v931_v10 = vunpack.c.l.bf16 %v930_v8  ;;  %v932_v11 = vunpack.c.h.bf16 %v930_v8  ;;  %v935_v12 = vunpack.c.l.bf16 %v961_v9  ;;  %v936_v13 = vunpack.c.h.bf16 %v961_v9  ;;  %v962_v14 = vld [vmem:[%s1613_s2 + $0x10] sm:$0xff]   ;;  %v963_v15 = vld [vmem:[%s1613_s2 + $0x18] sm:$0xff]   ;;  %v964_v16 = vld [vmem:[%s1613_s2 + $0x20] sm:$0xff]  }
  0x26   : > { %v939_v17 = vunpack.c.l.bf16 %v962_v14  ;;  %v940_v18 = vunpack.c.h.bf16 %v962_v14  ;;  %v943_v19 = vunpack.c.l.bf16 %v963_v15  ;;  %v944_v20 = vunpack.c.h.bf16 %v963_v15  ;;  %v965_v21 = vld [vmem:[%s1613_s2 + $0x28] sm:$0xff]   ;;  %v966_v22 = vld [vmem:[%s1613_s2 + $0x30] sm:$0xff]   ;;  %v967_v23 = vld [vmem:[%s1613_s2 + $0x38] sm:$0xff]  }
  0x27   : > { %271 = vst [vmem:[%s1616_s5] sm:$0xff] %v931_v10  ;;  %272 = vst [vmem:[%s1616_s5 + $0x8] sm:$0xff] %v932_v11  ;;  %v947_v24 = vunpack.c.l.bf16 %v964_v16  ;;  %v948_v25 = vunpack.c.h.bf16 %v964_v16  ;;  %v951_v26 = vunpack.c.l.bf16 %v965_v21  ;;  %v952_v27 = vunpack.c.h.bf16 %v965_v21 }
  0x28   : > { %273 = vst [vmem:[%s1616_s5 + $0x10] sm:$0xff] %v935_v12  ;;  %274 = vst [vmem:[%s1616_s5 + $0x18] sm:$0xff] %v936_v13  ;;  %v955_v28 = vunpack.c.l.bf16 %v966_v22  ;;  %v956_v29 = vunpack.c.h.bf16 %v966_v22  ;;  %v959_v30 = vunpack.c.l.bf16 %v967_v23  ;;  %v960_v31 = vunpack.c.h.bf16 %v967_v23 }
  0x29   : > { %275 = vst [vmem:[%s1616_s5 + $0x20] sm:$0xff] %v939_v17  ;;  %276 = vst [vmem:[%s1616_s5 + $0x28] sm:$0xff] %v940_v18 }
  0x2a   : > { %277 = vst [vmem:[%s1616_s5 + $0x30] sm:$0xff] %v943_v19  ;;  %278 = vst [vmem:[%s1616_s5 + $0x38] sm:$0xff] %v944_v20 }
  0x2b   : > { %279 = vst [vmem:[%s1616_s5 + $0x40] sm:$0xff] %v947_v24  ;;  %280 = vst [vmem:[%s1616_s5 + $0x48] sm:$0xff] %v948_v25 }
  0x2c   : > { %281 = vst [vmem:[%s1616_s5 + $0x50] sm:$0xff] %v951_v26  ;;  %282 = vst [vmem:[%s1616_s5 + $0x58] sm:$0xff] %v952_v27 }
  0x2d   : > { %283 = vst [vmem:[%s1616_s5 + $0x60] sm:$0xff] %v955_v28  ;;  %284 = vst [vmem:[%s1616_s5 + $0x68] sm:$0xff] %v956_v29 }
  0x2e   : > { %285 = vst [vmem:[%s1616_s5 + $0x70] sm:$0xff] %v959_v30  ;;  %286 = vst [vmem:[%s1616_s5 + $0x78] sm:$0xff] %v960_v31 }
  0x2f PF: > { %s1298_s8 = sld [smem:[#allocation5 + %s1182_s0]]  ;;  %v1076_v32 = vld [vmem:[%s1198_s6] sm:$0xff]   ;;  %v1077_v33 = vld [vmem:[%s1198_s6 + $0x8] sm:$0xff]   ;;  %v1078_v34 = vld [vmem:[%s1198_s6 + $0x10] sm:$0xff]   ;;  %p1066_p10 = scmp.eq.s32.totalorder %s1182_s0, 0 }
  0x30   : > { %1000 = vmatprep.subr.bf16.mxu0 %v1076_v32  ;;  %v1079_v35 = vld [vmem:[%s1198_s6 + $0x18] sm:$0xff]   ;;  %v288_v36 = vld [vmem:[%s1616_s5] sm:$0xff]  ;;  %v289_v37 = vld [vmem:[%s1616_s5 + $0x8] sm:$0xff] }
  0x31   : > { %1001 = vmatpush3.bf16.msra.mxu0 %v1076_v32  ;;  %v304_v38 = vpack.c.bf16 %v289_v37, %v288_v36  ;;  %v1080_v39 = vld [vmem:[%s1198_s6 + $0x20] sm:$0xff]   ;;  %v1081_v40 = vld [vmem:[%s1198_s6 + $0x28] sm:$0xff]   ;;  %v1082_v41 = vld [vmem:[%s1198_s6 + $0x30] sm:$0xff]  }
  0x32   : > { %1002 = vmatprep.subr.bf16.mxu0 %v1077_v33  ;;  %v1083_v42 = vld [vmem:[%s1198_s6 + $0x38] sm:$0xff]   ;;  %v290_v43 = vld [vmem:[%s1616_s5 + $0x10] sm:$0xff]  ;;  %v292_v45 = vld [vmem:[%s1616_s5 + $0x20] sm:$0xff] }
  0x33   : > { %1016 = vmatprep.mubr.bf16.mxu0 %v304_v38  ;;  %v291_v44 = vld [vmem:[%s1616_s5 + $0x18] sm:$0xff]  ;;  %v293_v46 = vld [vmem:[%s1616_s5 + $0x28] sm:$0xff]  ;;  %v294_v49 = vld [vmem:[%s1616_s5 + $0x30] sm:$0xff] }
  0x34   : > { %v305_v47 = vpack.c.bf16 %v291_v44, %v290_v43  ;;  %v306_v48 = vpack.c.bf16 %v293_v46, %v292_v45  ;;  %v295_v50 = vld [vmem:[%s1616_s5 + $0x38] sm:$0xff]  ;;  %v296_v51 = vld [vmem:[%s1616_s5 + $0x40] sm:$0xff]  ;;  %v297_v52 = vld [vmem:[%s1616_s5 + $0x48] sm:$0xff] }
  0x35   : > { %1003 = vmatpush3.bf16.msra.mxu0 %v1077_v33  ;;  %v307_v53 = vpack.c.bf16 %v295_v50, %v294_v49  ;;  %v308_v54 = vpack.c.bf16 %v297_v52, %v296_v51  ;;  %v298_v55 = vld [vmem:[%s1616_s5 + $0x50] sm:$0xff]  ;;  %v299_v56 = vld [vmem:[%s1616_s5 + $0x58] sm:$0xff]  ;;  %v300_v57 = vld [vmem:[%s1616_s5 + $0x60] sm:$0xff] }
  0x36   : > { %1004 = vmatprep.subr.bf16.mxu0 %v1078_v34  ;;  %v301_v58 = vld [vmem:[%s1616_s5 + $0x68] sm:$0xff]  ;;  %v309_v59 = vpack.c.bf16 %v299_v56, %v298_v55  ;;  %v302_v61 = vld [vmem:[%s1616_s5 + $0x70] sm:$0xff]  ;;  %v303_v62 = vld [vmem:[%s1616_s5 + $0x78] sm:$0xff] }
  0x37   : > { %v310_v60 = vpack.c.bf16 %v301_v58, %v300_v57  ;;  %v311_v63 = vpack.c.bf16 %v303_v62, %v302_v61 }
  0x39   : > { %1005 = vmatpush3.bf16.msra.mxu0 %v1078_v34 }
  0x3a   : > { %1006 = vmatprep.subr.bf16.mxu0 %v1079_v35 }
  0x3d   : > { %1007 = vmatpush3.bf16.msra.mxu0 %v1079_v35 }
  0x3e   : > { %1008 = vmatprep.subr.bf16.mxu0 %v1080_v39 }
  0x41   : > { %1009 = vmatpush3.bf16.msra.mxu0 %v1080_v39 }
  0x42   : > { %1010 = vmatprep.subr.bf16.mxu0 %v1081_v40 }
  0x45   : > { %1011 = vmatpush3.bf16.msra.mxu0 %v1081_v40 }
  0x46   : > { %1012 = vmatprep.subr.bf16.mxu0 %v1082_v41 }
  0x49   : > { %1013 = vmatpush3.bf16.msra.mxu0 %v1082_v41 }
  0x4a   : > { %1014 = vmatprep.subr.bf16.mxu0 %v1083_v42 }
  0x4d   : > { %1015 = vmatpush3.bf16.msra.mxu0 %v1083_v42 }
  0x50   : > { %1017 = vmatmul.mubr.bf16.vlgmr.msra.gmra.mrb[0].mxu0 %v305_v47 }
  0x51   : > { %1020 = vmatprep.mubr.bf16.mxu0 %v306_v48 }
  0x58   : > { %1021 = vmatmul.mubr.bf16.gmra.mrb[4].mxu0 %v307_v53 }
  0x59   : > { %1024 = vmatprep.mubr.bf16.mxu0 %v308_v54 }
  0x60   : > { %1025 = vmatmul.mubr.bf16.gmra.mrb[8].mxu0 %v309_v59 }
  0x61   : > { %1028 = vmatprep.mubr.bf16.mxu0 %v310_v60 }
  0x68   : > { %1029 = vmatmul.mubr.bf16.gmra.mrb[12].mxu0 %v311_v63 }
 0x123   : > { %v1018_v0 = vpop.f32.mrb[0].mxu0 }
 0x124   : > { %v410_v1 = vpop.f32.mrb[1].mxu0 }
 0x125   : > { %v1019_v2 = vpop.f32.mrb[2].mxu0 }
 0x126   : > { %v413_v3 = vpop.f32.mrb[3].mxu0  ;;  %v489_v17 = vpack.c.bf16 %v1019_v2, %v1018_v0 }
 0x127   : > { %v488_v16 = vpack.c.bf16 %v413_v3, %v410_v1 }
 0x12b   : > { %v1022_v4 = vpop.f32.mrb[4].mxu0 }
 0x12c   : > { %v426_v5 = vpop.f32.mrb[5].mxu0 }
 0x12d   : > { %v1023_v6 = vpop.f32.mrb[6].mxu0 }
 0x12e   : > { %v429_v7 = vpop.f32.mrb[7].mxu0 }
 0x133   : > { %v1026_v8 = vpop.f32.mrb[8].mxu0 }
 0x134   : > { %v442_v9 = vpop.f32.mrb[9].mxu0 }
 0x135   : > { %v1027_v10 = vpop.f32.mrb[10].mxu0 }
 0x136   : > { %v445_v11 = vpop.f32.mrb[11].mxu0 }
 0x13b   : > { %v1030_v12 = vpop.f32.mrb[12].mxu0 }
 0x13c   : > { %v458_v13 = vpop.f32.mrb[13].mxu0 }
 0x13d   : > { %v1031_v14 = vpop.f32.mrb[14].mxu0 }
 0x13e   : > { %v461_v15 = vpop.f32.mrb[15].mxu0 }
 0x13f   : > { %1135 = dma.done.wait (%p1066_p10), [#allocation3], 1024 }
 0x140   : > { %1137 = vsyncadd (%p1066_p10), [#allocation3], 4294966272  ;;  %1032 = vmatprep.subr.bf16.mxu1 %v488_v16  ;;  %v490_v18 = vpack.c.bf16 %v429_v7, %v426_v5  ;;  %v480_v19 = vld [vmem:[#allocation2] sm:$0xff]  ;;  %v491_v20 = vpack.c.bf16 %v1023_v6, %v1022_v4  ;;  %v492_v21 = vpack.c.bf16 %v445_v11, %v442_v9  ;;  %v493_v22 = vpack.c.bf16 %v1027_v10, %v1026_v8  ;;  %v481_v25 = vld [vmem:[#allocation2 + $0x8] sm:$0xff] }
 0x141   : > { %1033 = vmatpush3.bf16.msra.mxu1 %v488_v16  ;;  %1048 = vmatprep.mubr.bf16.mxu1 %v480_v19  ;;  %v494_v23 = vpack.c.bf16 %v461_v15, %v458_v13  ;;  %v495_v24 = vpack.c.bf16 %v1031_v14, %v1030_v12  ;;  %v482_v26 = vld [vmem:[#allocation2 + $0x10] sm:$0xff]  ;;  %v483_v27 = vld [vmem:[#allocation2 + $0x18] sm:$0xff]  ;;  %v484_v28 = vld [vmem:[#allocation2 + $0x20] sm:$0xff] }
 0x142   : > { %1034 = vmatprep.subr.bf16.mxu1 %v489_v17  ;;  %v485_v29 = vld [vmem:[#allocation2 + $0x28] sm:$0xff]  ;;  %v486_v30 = vld [vmem:[#allocation2 + $0x30] sm:$0xff]  ;;  %v487_v31 = vld [vmem:[#allocation2 + $0x38] sm:$0xff] }
 0x143   : > { %v1366_v32 = vld [vmem:[%s177_s28] ss:$0 sm:$0xff] }
 0x145   : > { %1035 = vmatpush3.bf16.msra.mxu1 %v489_v17 }
 0x146   : > { %1036 = vmatprep.subr.bf16.mxu1 %v490_v18 }
 0x149   : > { %1037 = vmatpush3.bf16.msra.mxu1 %v490_v18 }
 0x14a   : > { %1038 = vmatprep.subr.bf16.mxu1 %v491_v20 }
 0x14d   : > { %1039 = vmatpush3.bf16.msra.mxu1 %v491_v20 }
 0x14e   : > { %1040 = vmatprep.subr.bf16.mxu1 %v492_v21 }
 0x151   : > { %1041 = vmatpush3.bf16.msra.mxu1 %v492_v21 }
 0x152   : > { %1042 = vmatprep.subr.bf16.mxu1 %v493_v22 }
 0x155   : > { %1043 = vmatpush3.bf16.msra.mxu1 %v493_v22 }
 0x156   : > { %1044 = vmatprep.subr.bf16.mxu1 %v494_v23 }
 0x159   : > { %1045 = vmatpush3.bf16.msra.mxu1 %v494_v23 }
 0x15a   : > { %1046 = vmatprep.subr.bf16.mxu1 %v495_v24 }
 0x15d   : > { %1047 = vmatpush3.bf16.msra.mxu1 %v495_v24 }
 0x160   : > { %1049 = vmatmul.mubr.bf16.vlgmr.msra.gmra.mrb[0].mxu1 %v481_v25 }
 0x161   : > { %1052 = vmatprep.mubr.bf16.mxu1 %v482_v26 }
 0x168   : > { %1053 = vmatmul.mubr.bf16.gmra.mrb[4].mxu1 %v483_v27 }
 0x169   : > { %1056 = vmatprep.mubr.bf16.mxu1 %v484_v28 }
 0x170   : > { %1057 = vmatmul.mubr.bf16.gmra.mrb[8].mxu1 %v485_v29 }
 0x171   : > { %1060 = vmatprep.mubr.bf16.mxu1 %v486_v30 }
 0x178   : > { %1061 = vmatmul.mubr.bf16.gmra.mrb[12].mxu1 %v487_v31 }
 0x233   : > { %v1050_v33 = vpop.f32.mrb[0].mxu1 }
 0x234   : > { %v546_v34 = vadd.f32 %v1050_v33, %v1366_v32  ;;  %v537_v35 = vpop.f32.mrb[1].mxu1  ;;  %v1465_v33 = vstv %s1298_s8 }
 0x235   : > { %v538_v36 = vadd.f32 %v1366_v32, %v537_v35  ;;  %v1051_v37 = vpop.f32.mrb[2].mxu1 }
 0x236   : > { %v1370_v38 = vmax.f32 %v546_v34, 0.0  ;;  %v549_v39 = vadd.f32 %v1051_v37, %v1366_v32  ;;  %v540_v40 = vpop.f32.mrb[3].mxu1 }
 0x237   : > { %v1373_v41 = vmax.f32 %v538_v36, 0.0  ;;  %v541_v43 = vadd.f32 %v1366_v32, %v540_v40 }
 0x238   : > { %620 = vadd.xlane.f32.xlu1 %v1370_v38  ;;  %v1377_v42 = vmax.f32 %v549_v39, 0.0  ;;  %v667_v44 = vmul.f32 %v1370_v38, %v1370_v38 }
 0x239   : > { %616 = vadd.xlane.f32.xlu0 %v1373_v41  ;;  %v1383_v48 = vmax.f32 %v541_v43, 0.0  ;;  %v665_v54 = vmul.f32 %v1373_v41, %v1373_v41 }
 0x23a   : > { %v668_v49 = vmul.f32 %v1377_v42, %v1377_v42 }
 0x23b   : > { %v1054_v45 = vpop.f32.mrb[4].mxu1  ;;  %v666_v52 = vmul.f32 %v1383_v48, %v1383_v48 }
 0x23c   : > { %622 = vadd.xlane.f32.xlu1 %v1377_v42  ;;  %v553_v46 = vpop.f32.mrb[5].mxu1  ;;  %v562_v53 = vadd.f32 %v1054_v45, %v1366_v32 }
 0x23d   : > { %685 = vadd.xlane.f32.xlu0 %v667_v44  ;;  %v1055_v47 = vpop.f32.mrb[6].mxu1  ;;  %v554_v62 = vadd.f32 %v1366_v32, %v553_v46 }
 0x23e   : > { %v556_v50 = vpop.f32.mrb[7].mxu1  ;;  %v565_v51 = vadd.f32 %v1055_v47, %v1366_v32  ;;  %v1397_v61 = vmax.f32 %v562_v53, 0.0 }
 0x23f   : > { %v557_v59 = vadd.f32 %v1366_v32, %v556_v50  ;;  %v1404_v0 = vmax.f32 %v554_v62, 0.0 }
 0x240   : > { %687 = vadd.xlane.f32.xlu1 %v668_v49  ;;  %v1394_v56 = vmax.f32 %v565_v51, 0.0  ;;  %v671_v6 = vmul.f32 %v1397_v61, %v1397_v61 }
 0x241   : > { %618 = vadd.xlane.f32.xlu0 %v1383_v48  ;;  %v1402_v63 = vmax.f32 %v557_v59, 0.0  ;;  %v669_v10 = vmul.f32 %v1404_v0, %v1404_v0 }
 0x242   : > { %v672_v4 = vmul.f32 %v1394_v56, %v1394_v56 }
 0x243   : > { %v1058_v55 = vpop.f32.mrb[8].mxu1  ;;  %v670_v8 = vmul.f32 %v1402_v63, %v1402_v63 }
 0x244   : > { %683 = vadd.xlane.f32.xlu1 %v666_v52  ;;  %v569_v57 = vpop.f32.mrb[9].mxu1  ;;  %v578_v9 = vadd.f32 %v1058_v55, %v1366_v32 }
 0x245   : > { %681 = vadd.xlane.f32.xlu0 %v665_v54  ;;  %v1059_v58 = vpop.f32.mrb[10].mxu1  ;;  %v570_v14 = vadd.f32 %v1366_v32, %v569_v57 }
 0x246   : > { %v572_v60 = vpop.f32.mrb[11].mxu1  ;;  %v581_v7 = vadd.f32 %v1059_v58, %v1366_v32  ;;  %v1421_v13 = vmax.f32 %v578_v9, 0.0 }
 0x247   : > { %v573_v12 = vadd.f32 %v1366_v32, %v572_v60  ;;  %v1428_v16 = vmax.f32 %v570_v14, 0.0 }
 0x248   : > { %630 = vadd.xlane.f32.xlu1 %v1394_v56  ;;  %v1418_v11 = vmax.f32 %v581_v7, 0.0  ;;  %v675_v18 = vmul.f32 %v1421_v13, %v1421_v13 }
 0x249   : > { %628 = vadd.xlane.f32.xlu0 %v1397_v61  ;;  %v1426_v15 = vmax.f32 %v573_v12, 0.0  ;;  %v673_v22 = vmul.f32 %v1428_v16, %v1428_v16 }
 0x24a   : > { %v676_v17 = vmul.f32 %v1418_v11, %v1418_v11 }
 0x24b   : > { %v1062_v1 = vpop.f32.mrb[12].mxu1  ;;  %v674_v20 = vmul.f32 %v1426_v15, %v1426_v15 }
 0x24c   : > { %626 = vadd.xlane.f32.xlu1 %v1402_v63  ;;  %v585_v2 = vpop.f32.mrb[13].mxu1  ;;  %v594_v21 = vadd.f32 %v1062_v1, %v1366_v32 }
 0x24d   : > { %624 = vadd.xlane.f32.xlu0 %v1404_v0  ;;  %v1063_v3 = vpop.f32.mrb[14].mxu1  ;;  %v586_v26 = vadd.f32 %v1366_v32, %v585_v2 }
 0x24e   : > { %v588_v5 = vpop.f32.mrb[15].mxu1  ;;  %v597_v19 = vadd.f32 %v1063_v3, %v1366_v32  ;;  %v1445_v25 = vmax.f32 %v594_v21, 0.0 }
 0x24f   : > { %v589_v24 = vadd.f32 %v1366_v32, %v588_v5  ;;  %v1452_v28 = vmax.f32 %v586_v26, 0.0 }
 0x250   : > { %695 = vadd.xlane.f32.xlu1 %v672_v4  ;;  %v1442_v23 = vmax.f32 %v597_v19, 0.0  ;;  %v679_v32 = vmul.f32 %v1445_v25, %v1445_v25 }
 0x251   : > { %693 = vadd.xlane.f32.xlu0 %v671_v6  ;;  %v1450_v27 = vmax.f32 %v589_v24, 0.0  ;;  %v677_v30 = vmul.f32 %v1452_v28, %v1452_v28 }
 0x252   : > { %v680_v31 = vmul.f32 %v1442_v23, %v1442_v23 }
 0x253   : > { %v678_v29 = vmul.f32 %v1450_v27, %v1450_v27 }
 0x254   : > { %691 = vadd.xlane.f32.xlu1 %v670_v8 }
 0x255   : > { %689 = vadd.xlane.f32.xlu0 %v669_v10 }
 0x258   : > { %638 = vadd.xlane.f32.xlu1 %v1418_v11 }
 0x259   : > { %636 = vadd.xlane.f32.xlu0 %v1421_v13 }
 0x25c   : > { %634 = vadd.xlane.f32.xlu1 %v1426_v15 }
 0x25d   : > { %632 = vadd.xlane.f32.xlu0 %v1428_v16 }
 0x260   : > { %703 = vadd.xlane.f32.xlu1 %v676_v17 }
 0x261   : > { %701 = vadd.xlane.f32.xlu0 %v675_v18 }
 0x264   : > { %699 = vadd.xlane.f32.xlu1 %v674_v20 }
 0x265   : > { %697 = vadd.xlane.f32.xlu0 %v673_v22 }
 0x268   : > { %646 = vadd.xlane.f32.xlu1 %v1442_v23 }
 0x269   : > { %644 = vadd.xlane.f32.xlu0 %v1445_v25 }
 0x26c   : > { %642 = vadd.xlane.f32.xlu1 %v1450_v27 }
 0x26d   : > { %640 = vadd.xlane.f32.xlu0 %v1452_v28 }
 0x270   : > { %707 = vadd.xlane.f32.xlu1 %v678_v29 }
 0x271   : > { %705 = vadd.xlane.f32.xlu0 %v677_v30 }
 0x274   : > { %711 = vadd.xlane.f32.xlu1 %v680_v31 }
 0x275   : > { %709 = vadd.xlane.f32.xlu0 %v679_v32 }
 0x2c5   : > { %v621_v34 = vpop.xlane.xlu1 %620 }
 0x2c6   : > { %v617_v35 = vpop.xlane.xlu0 %616  ;;  %v651_v36 = vmul.f32 %v1465_v33, %v621_v34 }
 0x2c7   : > { %v1472_v51 = vmul.f32 %v1465_v33, %v617_v35 }
 0x2c8   : > { %v731_v43 = vmul.f32 %v651_v36, %v651_v36  ;;  %v779_v20 = vsub.f32 %v1370_v38, %v651_v36 }
 0x2c9   : > { %v623_v37 = vpop.xlane.xlu1 %622  ;;  %v729_v1 = vmul.f32 %v1472_v51, %v1472_v51 }
 0x2ca   : > { %v652_v39 = vmul.f32 %v1465_v33, %v623_v37  ;;  %v686_v40 = vpop.xlane.xlu0 %685 }
 0x2cb   : > { %v715_v44 = vmul.f32 %v686_v40, %v1465_v33 }
 0x2cc   : > { %v732_v47 = vmul.f32 %v652_v39, %v652_v39  ;;  %v780_v32 = vsub.f32 %v1377_v42, %v652_v39 }
 0x2cd   : > { %v747_v45 = vsub.f32 %v715_v44, %v731_v43  ;;  %v688_v46 = vpop.xlane.xlu1 %687 }
 0x2ce   : > { %v716_v49 = vmul.f32 %v688_v46, %v1465_v33  ;;  %v619_v50 = vpop.xlane.xlu0 %618 }
 0x2cf   : > { %v763_v52 = vmax.f32 %v747_v45, 0.0  ;;  %v650_v53 = vmul.f32 %v1465_v33, %v619_v50 }
 0x2d0   : > { %v748_v54 = vsub.f32 %v716_v49, %v732_v47 }
 0x2d1   : > { %v795_v55 = vadd.f32 1e-05, %v763_v52  ;;  %v730_v57 = vmul.f32 %v650_v53, %v650_v53  ;;  %v684_v58 = vpop.xlane.xlu1 %683  ;;  %v778_v47 = vsub.f32 %v1383_v48, %v650_v53 }
 0x2d2   : > { %v764_v59 = vmax.f32 %v748_v54, 0.0  ;;  %v714_v60 = vmul.f32 %v684_v58, %v1465_v33  ;;  %v682_v62 = vpop.xlane.xlu0 %681 }
 0x2d3   : > { %1084 = vrsqrt.f32 %v795_v55  ;;  %v713_v2 = vmul.f32 %v682_v62, %v1465_v33  ;;  %v777_v55 = vsub.f32 %v1373_v41, %v1472_v51 }
 0x2d4   : > { %v796_v3 = vadd.f32 1e-05, %v764_v59  ;;  %v746_v4 = vsub.f32 %v714_v60, %v730_v57 }
 0x2d5   : > { %v745_v5 = vsub.f32 %v713_v2, %v729_v1  ;;  %v631_v6 = vpop.xlane.xlu1 %630 }
 0x2d6   : > { %1086 = vrsqrt.f32 %v796_v3  ;;  %v762_v7 = vmax.f32 %v746_v4, 0.0  ;;  %v629_v8 = vpop.xlane.xlu0 %628  ;;  %v1480_v17 = vmul.f32 %v1465_v33, %v631_v6 }
 0x2d7   : > { %v761_v9 = vmax.f32 %v745_v5, 0.0  ;;  %v1483_v19 = vmul.f32 %v1465_v33, %v629_v8 }
 0x2d8   : > { %v794_v10 = vadd.f32 1e-05, %v762_v7  ;;  %v736_v26 = vmul.f32 %v1480_v17, %v1480_v17 }
 0x2d9   : > { %v793_v12 = vadd.f32 1e-05, %v761_v9  ;;  %v627_v14 = vpop.xlane.xlu1 %626  ;;  %v735_v34 = vmul.f32 %v1483_v19, %v1483_v19 }
 0x2da   : > { %1088 = vrsqrt.f32 %v794_v10  ;;  %v625_v18 = vpop.xlane.xlu0 %624  ;;  %v1489_v29 = vmul.f32 %v1465_v33, %v627_v14 }
 0x2db   : > { %1090 = vrsqrt.f32 %v793_v12  ;;  %v1496_v35 = vmul.f32 %v1465_v33, %v625_v18 }
 0x2dc   : > { %v734_v42 = vmul.f32 %v1489_v29, %v1489_v29 }
 0x2dd   : > { %v1085_v21 = vpop.eup %1084  ;;  %v696_v22 = vpop.xlane.xlu1 %695  ;;  %v733_v49 = vmul.f32 %v1496_v35, %v1496_v35 }
 0x2de   : > { %v827_v24 = vmul.f32 %v1085_v21, %v779_v20  ;;  %v720_v30 = vmul.f32 %v696_v22, %v1465_v33  ;;  %v694_v31 = vpop.xlane.xlu0 %693  ;;  %v784_v20 = vsub.f32 %v1394_v56, %v1480_v17 }
 0x2df   : > { %v719_v38 = vmul.f32 %v694_v31, %v1465_v33 }
 0x2e0   : > { %v1087_v36 = vpop.eup %1086  ;;  %843 = vst [vmem:[%s1616_s5 + $0x10] sm:$0xff] %v827_v24  ;;  %v752_v37 = vsub.f32 %v720_v30, %v736_v26  ;;  %v783_v30 = vsub.f32 %v1397_v61, %v1483_v19 }
 0x2e1   : > { %v828_v40 = vmul.f32 %v1087_v36, %v780_v32  ;;  %v751_v43 = vsub.f32 %v719_v38, %v735_v34  ;;  %v692_v44 = vpop.xlane.xlu1 %691 }
 0x2e2   : > { %v768_v39 = vmax.f32 %v752_v37, 0.0  ;;  %v718_v45 = vmul.f32 %v692_v44, %v1465_v33  ;;  %v690_v46 = vpop.xlane.xlu0 %689  ;;  %v782_v44 = vsub.f32 %v1402_v63, %v1489_v29 }
 0x2e3   : > { %844 = vst [vmem:[%s1616_s5 + $0x18] sm:$0xff] %v828_v40  ;;  %v767_v50 = vmax.f32 %v751_v43, 0.0  ;;  %v717_v52 = vmul.f32 %v690_v46, %v1465_v33 }
 0x2e4   : > { %v1089_v54 = vpop.eup %1088  ;;  %v800_v57 = vadd.f32 1e-05, %v768_v39  ;;  %v750_v58 = vsub.f32 %v718_v45, %v734_v42  ;;  %v781_v45 = vsub.f32 %v1404_v0, %v1496_v35 }
 0x2e5   : > { %v1091_v59 = vpop.eup %1090  ;;  %v826_v60 = vmul.f32 %v1089_v54, %v778_v47  ;;  %v799_v62 = vadd.f32 1e-05, %v767_v50  ;;  %v749_v1 = vsub.f32 %v717_v52, %v733_v49  ;;  %v639_v2 = vpop.xlane.xlu1 %638 }
 0x2e6   : > { %v825_v3 = vmul.f32 %v1091_v59, %v777_v55  ;;  %1092 = vrsqrt.f32 %v800_v57  ;;  %v766_v48 = vmax.f32 %v750_v58, 0.0  ;;  %v637_v53 = vpop.xlane.xlu0 %636  ;;  %v1521_v6 = vmul.f32 %v1465_v33, %v639_v2 }
 0x2e7   : > { %842 = vst [vmem:[%s1616_s5 + $0x8] sm:$0xff] %v826_v60  ;;  %1094 = vrsqrt.f32 %v799_v62  ;;  %v765_v4 = vmax.f32 %v749_v1, 0.0  ;;  %v1524_v8 = vmul.f32 %v1465_v33, %v637_v53 }
 0x2e8   : > { %841 = vst [vmem:[%s1616_s5] sm:$0xff] %v825_v3  ;;  %v798_v41 = vadd.f32 1e-05, %v766_v48  ;;  %v740_v10 = vmul.f32 %v1521_v6, %v1521_v6 }
 0x2e9   : > { %v797_v51 = vadd.f32 1e-05, %v765_v4  ;;  %v635_v5 = vpop.xlane.xlu1 %634  ;;  %v739_v21 = vmul.f32 %v1524_v8, %v1524_v8 }
 0x2ea   : > { %1096 = vrsqrt.f32 %v798_v41  ;;  %v633_v7 = vpop.xlane.xlu0 %632  ;;  %v1529_v12 = vmul.f32 %v1465_v33, %v635_v5  ;;  %v788_v41 = vsub.f32 %v1418_v11, %v1521_v6 }
 0x2eb   : > { %1098 = vrsqrt.f32 %v797_v51  ;;  %v1537_v22 = vmul.f32 %v1465_v33, %v633_v7 }
 0x2ec   : > { %v738_v56 = vmul.f32 %v1529_v12, %v1529_v12  ;;  %v786_v6 = vsub.f32 %v1426_v15, %v1529_v12 }
 0x2ed   : > { %v704_v9 = vpop.xlane.xlu1 %703  ;;  %v737_v61 = vmul.f32 %v1537_v22, %v1537_v22 }
 0x2ee   : > { %v724_v14 = vmul.f32 %v704_v9, %v1465_v33  ;;  %v702_v18 = vpop.xlane.xlu0 %701 }
 0x2ef   : > { %v723_v24 = vmul.f32 %v702_v18, %v1465_v33 }
 0x2f0   : > { %v1093_v26 = vpop.eup %1092  ;;  %v756_v31 = vsub.f32 %v724_v14, %v740_v10  ;;  %v787_v10 = vsub.f32 %v1421_v13, %v1524_v8 }
 0x2f1   : > { %v1095_v32 = vpop.eup %1094  ;;  %v832_v34 = vmul.f32 %v1093_v26, %v784_v20  ;;  %v755_v38 = vsub.f32 %v723_v24, %v739_v21  ;;  %v700_v36 = vpop.xlane.xlu1 %699 }
 0x2f2   : > { %v831_v37 = vmul.f32 %v1095_v32, %v783_v30  ;;  %v772_v17 = vmax.f32 %v756_v31, 0.0  ;;  %v722_v40 = vmul.f32 %v700_v36, %v1465_v33  ;;  %v698_v43 = vpop.xlane.xlu0 %697  ;;  %v785_v36 = vsub.f32 %v1428_v16, %v1537_v22 }
 0x2f3   : > { %848 = vst [vmem:[%s1616_s5 + $0x38] sm:$0xff] %v832_v34  ;;  %v771_v19 = vmax.f32 %v755_v38, 0.0  ;;  %v721_v42 = vmul.f32 %v698_v43, %v1465_v33 }
 0x2f4   : > { %v1097_v39 = vpop.eup %1096  ;;  %847 = vst [vmem:[%s1616_s5 + $0x30] sm:$0xff] %v831_v37  ;;  %v804_v46 = vadd.f32 1e-05, %v772_v17  ;;  %v754_v63 = vsub.f32 %v722_v40, %v738_v56 }
 0x2f5   : > { %v1099_v29 = vpop.eup %1098  ;;  %v830_v47 = vmul.f32 %v1097_v39, %v782_v44  ;;  %v803_v49 = vadd.f32 1e-05, %v771_v19  ;;  %v753_v50 = vsub.f32 %v721_v42, %v737_v61  ;;  %v647_v52 = vpop.xlane.xlu1 %646 }
 0x2f6   : > { %v829_v54 = vmul.f32 %v1099_v29, %v781_v45  ;;  %1100 = vrsqrt.f32 %v804_v46  ;;  %v770_v55 = vmax.f32 %v754_v63, 0.0  ;;  %v645_v57 = vpop.xlane.xlu0 %644  ;;  %v664_v3 = vmul.f32 %v1465_v33, %v647_v52 }
 0x2f7   : > { %846 = vst [vmem:[%s1616_s5 + $0x28] sm:$0xff] %v830_v47  ;;  %1102 = vrsqrt.f32 %v803_v49  ;;  %v769_v0 = vmax.f32 %v753_v50, 0.0  ;;  %v663_v51 = vmul.f32 %v1465_v33, %v645_v57 }
 0x2f8   : > { %845 = vst [vmem:[%s1616_s5 + $0x20] sm:$0xff] %v829_v54  ;;  %v802_v35 = vadd.f32 1e-05, %v770_v55  ;;  %v744_v30 = vmul.f32 %v664_v3, %v664_v3  ;;  %v792_v63 = vsub.f32 %v1442_v23, %v664_v3 }
 0x2f9   : > { %v801_v58 = vadd.f32 1e-05, %v769_v0  ;;  %v643_v59 = vpop.xlane.xlu1 %642  ;;  %v743_v34 = vmul.f32 %v663_v51, %v663_v51  ;;  %v791_v47 = vsub.f32 %v1445_v25, %v663_v51 }
 0x2fa   : > { %1104 = vrsqrt.f32 %v802_v35  ;;  %v662_v60 = vmul.f32 %v1465_v33, %v643_v59  ;;  %v641_v62 = vpop.xlane.xlu0 %640 }
 0x2fb   : > { %1106 = vrsqrt.f32 %v801_v58  ;;  %v661_v1 = vmul.f32 %v1465_v33, %v641_v62 }
 0x2fc   : > { %v742_v48 = vmul.f32 %v662_v60, %v662_v60  ;;  %v790_v61 = vsub.f32 %v1450_v27, %v662_v60 }
 0x2fd   : > { %v708_v2 = vpop.xlane.xlu1 %707  ;;  %v741_v5 = vmul.f32 %v661_v1, %v661_v1  ;;  %v789_v42 = vsub.f32 %v1452_v28, %v661_v1 }
 0x2fe   : > { %v726_v53 = vmul.f32 %v708_v2, %v1465_v33  ;;  %v706_v4 = vpop.xlane.xlu0 %705 }
 0x2ff   : > { %v725_v7 = vmul.f32 %v706_v4, %v1465_v33 }
 0x300   : > { %v1101_v9 = vpop.eup %1100  ;;  %v758_v14 = vsub.f32 %v726_v53, %v742_v48 }
 0x301   : > { %v1103_v18 = vpop.eup %1102  ;;  %v836_v20 = vmul.f32 %v1101_v9, %v788_v41  ;;  %v757_v21 = vsub.f32 %v725_v7, %v741_v5  ;;  %v712_v24 = vpop.xlane.xlu1 %711 }
 0x302   : > { %v835_v26 = vmul.f32 %v1103_v18, %v787_v10  ;;  %v774_v31 = vmax.f32 %v758_v14, 0.0  ;;  %v728_v32 = vmul.f32 %v712_v24, %v1465_v33  ;;  %v710_v11 = vpop.xlane.xlu0 %709 }
 0x303   : > { %852 = vst [vmem:[%s1616_s5 + $0x58] sm:$0xff] %v836_v20  ;;  %v773_v13 = vmax.f32 %v757_v21, 0.0  ;;  %v727_v8 = vmul.f32 %v710_v11, %v1465_v33 }
 0x304   : > { %v1105_v38 = vpop.eup %1104  ;;  %851 = vst [vmem:[%s1616_s5 + $0x50] sm:$0xff] %v835_v26  ;;  %v806_v37 = vadd.f32 1e-05, %v774_v31  ;;  %v760_v56 = vsub.f32 %v728_v32, %v744_v30 }
 0x305   : > { %v1107_v17 = vpop.eup %1106  ;;  %v834_v15 = vmul.f32 %v1105_v38, %v786_v6  ;;  %v805_v12 = vadd.f32 1e-05, %v773_v13  ;;  %v759_v40 = vsub.f32 %v727_v8, %v743_v34 }
 0x306   : > { %v833_v43 = vmul.f32 %v1107_v17, %v785_v36  ;;  %1108 = vrsqrt.f32 %v806_v37  ;;  %v776_v44 = vmax.f32 %v760_v56, 0.0 }
 0x307   : > { %850 = vst [vmem:[%s1616_s5 + $0x48] sm:$0xff] %v834_v15  ;;  %1110 = vrsqrt.f32 %v805_v12  ;;  %v775_v33 = vmax.f32 %v759_v40, 0.0 }
 0x308   : > { %849 = vst [vmem:[%s1616_s5 + $0x40] sm:$0xff] %v833_v43  ;;  %v808_v16 = vadd.f32 1e-05, %v776_v44 }
 0x309   : > { %v807_v22 = vadd.f32 1e-05, %v775_v33 }
 0x30a   : > { %1112 = vrsqrt.f32 %v808_v16 }
 0x30b   : > { %1114 = vrsqrt.f32 %v807_v22 }
 0x310   : > { %v1109_v19 = vpop.eup %1108 }
 0x311   : > { %v1111_v39 = vpop.eup %1110  ;;  %v838_v45 = vmul.f32 %v1109_v19, %v790_v61 }
 0x312   : > { %v837_v46 = vmul.f32 %v1111_v39, %v789_v42 }
 0x313   : > { %854 = vst [vmem:[%s1616_s5 + $0x68] sm:$0xff] %v838_v45 }
 0x314   : > { %v1113_v29 = vpop.eup %1112  ;;  %853 = vst [vmem:[%s1616_s5 + $0x60] sm:$0xff] %v837_v46 }
 0x315   : > { %v1115_v27 = vpop.eup %1114  ;;  %v840_v49 = vmul.f32 %v1113_v29, %v792_v63 }
 0x316   : > { %v839_v50 = vmul.f32 %v1115_v27, %v791_v47 }
 0x317   : > { %856 = vst [vmem:[%s1616_s5 + $0x78] sm:$0xff] %v840_v49 }
 0x318   : > { %855 = vst [vmem:[%s1616_s5 + $0x70] sm:$0xff] %v839_v50 }
 0x319 PF: > { %s21_s23 = sadd.s32 1, %s1140_s23  }
 0x31a   : > { %p18_p11 = scmp.ge.s32.totalorder %s21_s23, 5  }
 0x31c   :  { %20 = sbr.rel (!%p18_p11) target bundleno = 16 (0x10), region = 111 }
 0x323   :  { %868 = vsyncmov [#allocation3] }
 0x326   :  { %s869_s26 = vpop.sfrf %868 }
 0x327   :  { %p927_p12 = scmp.ne.s32.totalorder %s869_s26, 0 }
 0x329   :  { %873 = shalt.err (%p927_p12)  }

</bundles_post_ra>
